<compile_context>
chip_gen: v5e
topology: v5e:2x2
jax: 0.10.0
libtpu: 0.0.40
codegen_flags: <defaults>
</compile_context>

<pallas_src>
import functools

import jax
import jax.numpy as jnp
from jax.experimental import pallas as pl
from jax.experimental.pallas import tpu as pltpu


def _focal_loss_kernel(logits_ref, side_ref, out_ref, *,
                       alpha, gamma, n_total, tile_n):
    i = pl.program_id(0)

    x = logits_ref[...].astype(jnp.float32)              # (TILE_N, C)
    side = side_ref[...]                                  # (TILE_N, 2) f32
    wy = side[:, 0:1]                                     # (TILE_N, 1) = class_weights[target]
    t = pltpu.bitcast(side[:, 1:2], jnp.int32)            # (TILE_N, 1) target ids

    # Row-validity mask for the (possibly partial) last tile. Invariant: garbage
    # rows from block padding never contaminate valid rows because every reduction
    # below is along the class axis only; they are dropped by the final select.
    row_ids = jax.lax.broadcasted_iota(jnp.int32, (tile_n, 1), 0) + i * tile_n
    valid = row_ids < n_total                              # (TILE_N, 1) bool

    # Numerically-stable log-softmax pieces (full logp is never materialized).
    m = jnp.max(x, axis=-1, keepdims=True)                 # (TILE_N, 1)
    z = x - m                                              # (TILE_N, C)
    lse = jnp.log(jnp.sum(jnp.exp(z), axis=-1, keepdims=True))  # (TILE_N, 1)

    # Target shifted-logit selected via vselect + reduce (no float one-hot).
    cls_ids = jax.lax.broadcasted_iota(jnp.int32, x.shape, 1)   # (TILE_N, C)
    z_y = jnp.sum(jnp.where(cls_ids == t, z, 0.0), axis=-1, keepdims=True)
    logp_y = z_y - lse                                     # (TILE_N, 1)

    # F.cross_entropy(..., weight=w, reduction='none') -> -w[y] * log_softmax(x)[y]
    ce = -wy * logp_y                                      # (TILE_N, 1)
    pt = jnp.exp(-ce)
    one_minus_pt = 1.0 - pt

    # Specialize the (1 - pt) ** gamma modulating factor on the static gamma.
    g = float(gamma)
    if g == 0.0:
        mod = jnp.ones_like(one_minus_pt)
    elif g == 1.0:
        mod = one_minus_pt
    elif g == 2.0:
        mod = one_minus_pt * one_minus_pt
    elif g.is_integer() and 0.0 < g <= 8.0:
        mod = one_minus_pt
        for _ in range(int(g) - 1):
            mod = mod * one_minus_pt
    else:
        # Clamp: with negative class weights pt can exceed 1 and power would NaN.
        mod = jnp.power(jnp.maximum(one_minus_pt, 0.0), g)

    focal = float(alpha) * mod * ce                        # (TILE_N, 1)
    focal = jnp.where(valid, focal, 0.0)                   # drop padded rows

    partial = jnp.sum(focal)                               # scalar partial sum
    # Each tile owns its own lane-aligned output block; wrapper reads [:, 0, 0].
    out_ref[...] = jnp.broadcast_to(partial, out_ref.shape).astype(jnp.float32)


def reweighted_focal_loss(logits, targets, class_weights=None,
                          alpha=1.0, gamma=1.0, tile_n=None):
    """Pallas TPU implementation of ReweightedFocalLoss.forward."""
    n, c = logits.shape
    targets = targets.astype(jnp.int32)

    # Per-sample class weight gathered in plain XLA (cheap (N,) gather).
    if class_weights is None:
        w_y = jnp.ones((n,), jnp.float32)
    else:
        w_y = class_weights.astype(jnp.float32)[targets]

    # Fuse the two per-sample side inputs into a single (N, 2) f32 array so each
    # grid step issues 2 input DMAs instead of 3 (targets ride as bitcast f32).
    t_bits = jax.lax.bitcast_convert_type(targets, jnp.float32)
    side = jnp.stack([w_y, t_bits], axis=1)                # (N, 2) f32

    if tile_n is None:
        itemsize = jnp.dtype(logits.dtype).itemsize
        # Size the tile against the f32 working set: double-buffered input block
        # (2 x itemsize) plus ~3 f32 temporaries of the same (tile_n, C) footprint.
        per_row_bytes = c * (2 * itemsize + 3 * 4)
        budget_bytes = 12 * 1024 * 1024
        tile_n = max(8, budget_bytes // max(1, per_row_bytes))
        # v7x megacore: keep >= 4 grid steps when N allows so the "parallel" grid
        # axis load-balances across both TensorCores (no-op on v5e/v6e).
        if n >= 4 * 8:
            tile_n = min(tile_n, -(-n // 4))
    tile_n = int(min(tile_n, n))
    if tile_n != n:
        tile_n = max(8, (tile_n // 8) * 8)   # second-to-last block dim multiple of 8
    num_tiles = pl.cdiv(n, tile_n)

    # TODO(synk): for vocab-scale C (>= 32k) add a second "arbitrary" grid axis over C
    # with an online (flash-style) running max/sum in VMEM scratch instead of one
    # block over all of C (keeps blocks in the 2-8 MiB sweet spot on v7x).
    # TODO(synk): for C < 128 lane utilization is C/128; packing several rows per
    # lane-row (or dispatching to plain XLA) would be faster for tiny class counts.

    kernel = functools.partial(
        _focal_loss_kernel,
        alpha=float(alpha), gamma=float(gamma), n_total=n, tile_n=tile_n,
    )

    out = pl.pallas_call(
        kernel,
        out_shape=jax.ShapeDtypeStruct((num_tiles, 8, 128), jnp.float32),
        grid=(num_tiles,),
        in_specs=[
            pl.BlockSpec((tile_n, c), lambda i: (i, 0)),   # logits tile
            pl.BlockSpec((tile_n, 2), lambda i: (i, 0)),   # fused (w_y, target) tile
        ],
        out_specs=pl.BlockSpec((1, 8, 128), lambda i: (i, 0, 0)),
        compiler_params=pltpu.CompilerParams(
            dimension_semantics=("parallel",),             # independent tiles -> megacore
            vmem_limit_bytes=48 * 1024 * 1024,             # safe under v7x 64 MiB/TC
        ),
    )(logits, side)

    partial_sums = out[:, 0, 0]                            # (num_tiles,)
    # Module semantics: CE(reduction='none') -> focal -> .mean() over N samples.
    return jnp.sum(partial_sums) / jnp.float32(n)


def _reference(logits, targets, class_weights, alpha=1.0, gamma=1.0):
    """Plain-JAX reference matching F.cross_entropy(weight=..., reduction='none')."""
    logp = jax.nn.log_softmax(logits.astype(jnp.float32), axis=-1)
    logp_y = jnp.take_along_axis(logp, targets[:, None].astype(jnp.int32), axis=-1)[:, 0]
    if class_weights is None:
        w_y = jnp.ones_like(logp_y)
    else:
        w_y = class_weights.astype(jnp.float32)[targets]
    ce = -w_y * logp_y
    pt = jnp.exp(-ce)
    focal = alpha * (1.0 - pt) ** gamma * ce
    return jnp.mean(focal)


if __name__ == "__main__":
    key = jax.random.PRNGKey(0)
    k1, k2, k3, k4, k5, k6 = jax.random.split(key, 6)

    # --- Small shape matching the module's (N, C) cross-entropy convention ---
    N, C = 8, 16
    logits = jax.random.normal(k1, (N, C), dtype=jnp.float32)
    targets = jax.random.randint(k2, (N,), 0, C, dtype=jnp.int32)
    class_weights = jnp.linspace(0.5, 1.5, C, dtype=jnp.float32)
    alpha, gamma = 1.0, 1.0  # module defaults

    loss = reweighted_focal_loss(logits, targets, class_weights, alpha=alpha, gamma=gamma)
    loss = jax.block_until_ready(loss)
    ref = _reference(logits, targets, class_weights, alpha=alpha, gamma=gamma)
    assert jnp.allclose(loss, ref, rtol=1e-5, atol=1e-5), (loss, ref)

    # --- Exercise the tiled + partial-tile-mask path (N not a multiple of TILE_N) ---
    N2, C2 = 20, 16
    logits2 = jax.random.normal(k3, (N2, C2), dtype=jnp.float32)
    targets2 = jax.random.randint(k4, (N2,), 0, C2, dtype=jnp.int32)
    class_weights2 = jnp.linspace(0.5, 2.0, C2, dtype=jnp.float32)

    loss2 = reweighted_focal_loss(logits2, targets2, class_weights2,
                                  alpha=0.25, gamma=2.0, tile_n=8)
    loss2 = jax.block_until_ready(loss2)
    ref2 = _reference(logits2, targets2, class_weights2, alpha=0.25, gamma=2.0)
    assert jnp.allclose(loss2, ref2, rtol=1e-5, atol=1e-5), (loss2, ref2)

    # --- Auto tile sizing + bf16 logits + >=4-tile megacore split + power(gamma) path ---
    N3, C3 = 96, 256
    logits3 = jax.random.normal(k5, (N3, C3), dtype=jnp.bfloat16)
    targets3 = jax.random.randint(k6, (N3,), 0, C3, dtype=jnp.int32)
    class_weights3 = jnp.linspace(0.25, 1.75, C3, dtype=jnp.float32)

    loss3 = reweighted_focal_loss(logits3, targets3, class_weights3,
                                  alpha=0.5, gamma=1.5)
    loss3 = jax.block_until_ready(loss3)
    ref3 = _reference(logits3, targets3, class_weights3, alpha=0.5, gamma=1.5)
    assert jnp.allclose(loss3, ref3, rtol=1e-4, atol=1e-4), (loss3, ref3)

    print("KERNEL_OK")
</pallas_src>

<mosaic_0001>
module attributes {stable_mosaic.version = 11 : i64} {
  func.func @_focal_loss_kernel(%arg0: i32, %arg1: memref<8x16xf32, #tpu.memory_space<vmem>>, %arg2: memref<8x2xf32, #tpu.memory_space<vmem>>, %arg3: memref<1x8x128xf32, #tpu.memory_space<vmem>>) attributes {dimension_semantics = [#tpu.dimension_semantics<parallel>], iteration_bounds = array<i64: 1>, scalar_prefetch = 0 : i64, scratch_operands = 0 : i64, tpu.core_type = #tpu.core_type<tc>, window_params = [{transform_indices = @transform_0, window_bounds = array<i64: 8, 16>}, {transform_indices = @transform_1, window_bounds = array<i64: 8, 2>}, {transform_indices = @transform_2, window_bounds = array<i64: 1, 8, 128>}]} {
    %c0 = arith.constant 0 : index
    %c0_0 = arith.constant 0 : index
    %0 = vector.load %arg1[%c0, %c0_0] : memref<8x16xf32, #tpu.memory_space<vmem>>, vector<8x16xf32>
    %c0_1 = arith.constant 0 : index
    %c0_2 = arith.constant 0 : index
    %1 = vector.load %arg2[%c0_1, %c0_2] : memref<8x2xf32, #tpu.memory_space<vmem>>, vector<8x2xf32>
    %2 = vector.extract_strided_slice %1 {offsets = [0, 0], sizes = [8, 1], strides = [1, 1]} : vector<8x2xf32> to vector<8x1xf32>
    %3 = vector.extract_strided_slice %1 {offsets = [0, 1], sizes = [8, 1], strides = [1, 1]} : vector<8x2xf32> to vector<8x1xf32>
    %4 = tpu.bitcast %3 : vector<8x1xf32> -> vector<8x1xi32>
    %5 = tpu.iota {dimensions = array<i32: 0>} : vector<8x1xi32>
    %c8_i32 = arith.constant 8 : i32
    %6 = arith.muli %arg0, %c8_i32 : i32
    %7 = vector.broadcast %6 : i32 to vector<8x1xi32>
    %8 = arith.addi %5, %7 : vector<8x1xi32>
    %c8_i32_3 = arith.constant 8 : i32
    %9 = vector.broadcast %c8_i32_3 : i32 to vector<8x1xi32>
    %10 = arith.cmpi slt, %8, %9 : vector<8x1xi32>
    %cst = arith.constant dense<0xFF800000> : vector<8xf32>
    %11 = vector.multi_reduction <maximumf>, %0, %cst [1] : vector<8x16xf32> to vector<8xf32>
    %12 = vector.shape_cast %11 : vector<8xf32> to vector<8x1xf32>
    %13 = vector.broadcast %12 : vector<8x1xf32> to vector<8x16xf32>
    %14 = arith.subf %0, %13 : vector<8x16xf32>
    %15 = math.exp %14 : vector<8x16xf32>
    %cst_4 = arith.constant dense<0.000000e+00> : vector<8xf32>
    %16 = vector.multi_reduction <add>, %15, %cst_4 [1] : vector<8x16xf32> to vector<8xf32>
    %17 = vector.shape_cast %16 : vector<8xf32> to vector<8x1xf32>
    %18 = math.log %17 : vector<8x1xf32>
    %19 = tpu.iota {dimensions = array<i32: 1>} : vector<8x16xi32>
    %20 = vector.broadcast %4 : vector<8x1xi32> to vector<8x16xi32>
    %21 = arith.cmpi eq, %19, %20 : vector<8x16xi32>
    %cst_5 = arith.constant 0.000000e+00 : f32
    %22 = vector.broadcast %cst_5 : f32 to vector<8x16xf32>
    %23 = arith.select %21, %14, %22 : vector<8x16xi1>, vector<8x16xf32>
    %cst_6 = arith.constant dense<0.000000e+00> : vector<8xf32>
    %24 = vector.multi_reduction <add>, %23, %cst_6 [1] : vector<8x16xf32> to vector<8xf32>
    %25 = vector.shape_cast %24 : vector<8xf32> to vector<8x1xf32>
    %26 = arith.subf %25, %18 : vector<8x1xf32>
    %cst_7 = arith.constant 0.000000e+00 : f32
    %27 = vector.broadcast %cst_7 : f32 to vector<8x1xf32>
    %28 = arith.subf %27, %2 : vector<8x1xf32>
    %29 = arith.mulf %28, %26 : vector<8x1xf32>
    %cst_8 = arith.constant 0.000000e+00 : f32
    %30 = vector.broadcast %cst_8 : f32 to vector<8x1xf32>
    %31 = arith.subf %30, %29 : vector<8x1xf32>
    %32 = math.exp %31 : vector<8x1xf32>
    %cst_9 = arith.constant 1.000000e+00 : f32
    %33 = vector.broadcast %cst_9 : f32 to vector<8x1xf32>
    %34 = arith.subf %33, %32 : vector<8x1xf32>
    %cst_10 = arith.constant 1.000000e+00 : f32
    %35 = vector.broadcast %cst_10 : f32 to vector<8x1xf32>
    %36 = arith.mulf %35, %34 : vector<8x1xf32>
    %37 = arith.mulf %36, %29 : vector<8x1xf32>
    %cst_11 = arith.constant 0.000000e+00 : f32
    %38 = vector.broadcast %cst_11 : f32 to vector<8x1xf32>
    %39 = arith.select %10, %37, %38 : vector<8x1xi1>, vector<8x1xf32>
    %40 = vector.shape_cast %39 : vector<8x1xf32> to vector<1x8x1xf32>
    %cst_12 = arith.constant dense<0.000000e+00> : vector<1xf32>
    %41 = vector.multi_reduction <add>, %40, %cst_12 [1, 2] : vector<1x8x1xf32> to vector<1xf32>
    %42 = vector.shape_cast %41 : vector<1xf32> to vector<1x1x1xf32>
    %43 = vector.extract %42[0, 0, 0] : f32 from vector<1x1x1xf32>
    %44 = vector.broadcast %43 : f32 to vector<1x8x128xf32>
    %c0_13 = arith.constant 0 : index
    %c0_14 = arith.constant 0 : index
    %c0_15 = arith.constant 0 : index
    %45 = vector.load %arg3[%c0_13, %c0_14, %c0_15] : memref<1x8x128xf32, #tpu.memory_space<vmem>>, vector<1x8x128xf32>
    tpu.vector_store %arg3[%c0_13, %c0_14, %c0_15], %44 {strides = array<i32>} : memref<1x8x128xf32, #tpu.memory_space<vmem>>, vector<1x8x128xf32>,
    return
  }
  func.func @transform_0(%arg0: i32) -> (i32, i32) {
    %c0_i32 = arith.constant 0 : i32
    %c0_i32_0 = arith.constant 0 : i32
    return %arg0, %c0_i32 : i32, i32
  }
  func.func @transform_1(%arg0: i32) -> (i32, i32) {
    %c0_i32 = arith.constant 0 : i32
    %c0_i32_0 = arith.constant 0 : i32
    return %arg0, %c0_i32 : i32, i32
  }
  func.func @transform_2(%arg0: i32) -> (i32, i32, i32) {
    %c0_i32 = arith.constant 0 : i32
    %c0_i32_0 = arith.constant 0 : i32
    %c0_i32_1 = arith.constant 0 : i32
    return %arg0, %c0_i32, %c0_i32_0 : i32, i32, i32
  }
}

</mosaic_0001>

<bundles_post_ra>
// kernel: tpu_custom_call.1
= control target key start
LH: loop header
LB: loop body
LE: loop exit
PB: predicated region body
PF: predicated region fallthrough
CT: control target
= control target key end

     0   :  { %vm21_vm0 = vcmask 130048   ;;  %s147_s0 = inlined_call_operand.vmem [shape: f32[8,16], index: 0, kind: input, shape index: {}]   ;;  %s148_s1 = inlined_call_operand.vmem [shape: f32[8,2], index: 1, kind: input, shape index: {}]   ;;  %s149_s2 = inlined_call_operand.hbm [shape: f32[1,8,128], index: 2, kind: output, shape index: {}]  }
   0x1   :  { %v12_v0 = vld [vmem:[%s147_s0] sm:$0xff] }
   0x2   :  { %7 = vsyncpa [#allocation3], 0  ;;  %v22_v1 = vsel %vm21_vm0, %v12_v0, -inf  ;;  %v118_v2 = vmov 1   ;;  %v13_v3 = vld [vmem:[%s148_s1] sm:$0xff]  ;;  %v33_v9 = vlaneseq  ;;  %vm52_vm2 = vcmask 7168  }
   0x3   :  { %85 = vset.pattern.permute.xlu0 %v118_v2  ;;  %v44_v17 = vsub.f32 0.0, %v13_v3  ;;  %s119_s0 = smov [#allocation2]   ;;  %s72_s15 = sshll.u32 %s149_s2, 4  ;;  %s73_s15 = int_to_ptr.hbm [resolvable:$true] %s72_s15 }
   0x4   :  { %23 = vmax.xlane.f32.xlu0 %v22_v1  ;;  %v34_v10 = vand.u32 127, %v33_v9  ;;  %s70_s1 = sshll.u32 %s119_s0, 4  ;;  %s71_s1 = int_to_ptr.vmem [resolvable:$true] %s70_s1 }
  0x18   :  { %36 = vperm.xlu0 %85, %v13_v3  }
  0x77   :  { %v24_v4 = vpop.xlane.xlu0 %23 }
  0x78   :  { %v25_v5 = vsub.f32 %v12_v0, %v24_v4 }
  0x7a   :  { %v26_v6 = vmul.f32 1.442695, %v25_v5 }
  0x7c   :  { %86 = vpow2.f32 %v26_v6 }
  0x82   :  { %v87_v7 = vpop.eup %86 }
  0x83   :  { %v28_v8 = vsel %vm21_vm0, %v87_v7, 0.0 }
  0x84   :  { %29 = vadd.xlane.f32.xlu1 %v28_v8 }
  0x8a   :  { %v37_v11 = vpop.permute.xlu0 %36 }
  0x8b   :  { %vm38_vm1 = vcmp.eq.s32.totalorder %v34_v10, %v37_v11 }
  0x8c   :  { %v39_v12 = vsel %vm38_vm1, %v25_v5, 0.0 }
  0x8d   :  { %v40_v13 = vsel %vm21_vm0, %v39_v12, 0.0 }
  0x8e   :  { %41 = vadd.xlane.f32.xlu1 %v40_v13 }
  0xf7   :  { %v30_v14 = vpop.xlane.xlu1 %29 }
  0xf8   :  { %88 = vlog2.f32 %v30_v14 }
  0xfe   :  { %v89_v15 = vpop.eup %88 }
  0xff   :  { %v32_v16 = vmul.f32 0.6931472, %v89_v15 }
 0x101   :  { %v42_v18 = vpop.xlane.xlu1 %41 }
 0x102   :  { %v43_v19 = vsub.f32 %v42_v18, %v32_v16 }
 0x104   :  { %v45_v20 = vmul.f32 %v44_v17, %v43_v19 }
 0x106   :  { %v46_v21 = vsub.f32 0.0, %v45_v20 }
 0x108   :  { %v47_v22 = vmul.f32 1.442695, %v46_v21 }
 0x10a   :  { %90 = vpow2.f32 %v47_v22 }
 0x110   :  { %v91_v23 = vpop.eup %90 }
 0x111   :  { %v49_v24 = vsub.f32 1.0, %v91_v23 }
 0x113   :  { %v50_v25 = vmul.f32 %v49_v24, %v45_v20 }
 0x115   :  { %v53_v26 = vsel %vm52_vm2, %v50_v25, 0.0 }
 0x116   :  { %54 = vadd.xlane.f32.xlu2 %v53_v26 }
 0x189   :  { %v55_v27 = vpop.xlane.xlu2 %54 }
 0x18a   :  { %v56_v28 = vrot.slane %v55_v27, 4 }
 0x18c   :  { %v57_v29 = vadd.f32 %v56_v28, %v55_v27 }
 0x18e   :  { %v58_v30 = vrot.slane %v57_v29, 2 }
 0x190   :  { %v59_v31 = vadd.f32 %v58_v30, %v57_v29 }
 0x192   :  { %v60_v32 = vrot.slane %v59_v31, 1 }
 0x194   :  { %v61_v33 = vadd.f32 %v60_v32, %v59_v31 }
 0x196   :  { %81 = vpush %v61_v33 }
 0x1c7   :  { %s82_s16 = spop %81 }
 0x1c8   :  { %v63_v34 = vstv %s82_s16 }
 0x1c9   :  { %64 = vst [vmem:[#allocation2] sm:$0xff] %v63_v34 }
 0x1ca   :  { %75 = dma.vmem_to_hbm [thread:$0]  %s71_s1, 128, %s73_s15, [#allocation3]  }
 0x1cb   :  { %116 = dma.done.wait [#allocation3], 128  }
 0x1cc   :  { %117 = vsyncadd [#allocation3], 4294967168 }
 0x1cd   :  { %80 = vsyncpa [#allocation3], 1 }

</bundles_post_ra>
